<compile_context>
chip_gen: v7x
topology: tpu7x:2x2x1
jax: 0.10.0
libtpu: 0.0.40
codegen_flags: <defaults>
</compile_context>

<pallas_src>
import jax
import jax.numpy as jnp
from jax.experimental import pallas as pl
from jax.experimental.pallas import tpu as pltpu


def _round_up(x, m):
    return ((x + m - 1) // m) * m


def mlp_kernel(x_ref, w1_ref, b1_ref, w2_ref, b2_ref, w3_ref, b3_ref, o_ref):
    x = x_ref[...]                                   # (TB, 784) bf16

    # fc1 + relu : bf16 MXU inputs, f32 accumulation & elementwise
    h1 = jnp.dot(x, w1_ref[...], preferred_element_type=jnp.float32) + b1_ref[...]
    h1 = jnp.maximum(h1, 0.0)
    # TODO(synk): dropout skipped — eval mode (F.dropout with training=False is identity).

    # fc2 + relu
    h2 = jnp.dot(h1.astype(jnp.bfloat16), w2_ref[...],
                 preferred_element_type=jnp.float32) + b2_ref[...]
    h2 = jnp.maximum(h2, 0.0)

    # fc3 + relu
    h3 = jnp.dot(h2.astype(jnp.bfloat16), w3_ref[...],
                 preferred_element_type=jnp.float32) + b3_ref[...]
    h3 = jnp.maximum(h3, 0.0)

    # numerically stable softmax over dim=1 (OUT=10 lanes; padded batch rows
    # get a softmax over bias-only logits and are sliced off in the wrapper)
    m = jnp.max(h3, axis=1, keepdims=True)
    e = jnp.exp(h3 - m)
    denom = jnp.sum(e, axis=1, keepdims=True)
    o_ref[...] = (e * pl.reciprocal(denom, approx=True)).astype(o_ref.dtype)


def prepare_params(params):
    """One-time weight prep: pad hidden dims to lane multiples + cast to bf16.

    Done ONCE (outside the per-call forward) so each forward only streams the
    already-padded bf16 weights.  Zero-padding is exactly semantics-preserving:
    ReLU(0) = 0 and the padded (zero) input rows of the next weight matrix
    contribute nothing.
    """
    w1, b1, w2, b2, w3, b3 = params
    H1, H2 = w1.shape[1], w2.shape[1]                      # 258, 85
    H1P, H2P = _round_up(H1, 128), _round_up(H2, 128)      # 384, 128

    w1p = jnp.pad(w1, ((0, 0), (0, H1P - H1)))
    b1p = jnp.pad(b1, ((0, 0), (0, H1P - H1)))
    w2p = jnp.pad(w2, ((0, H1P - H1), (0, H2P - H2)))
    b2p = jnp.pad(b2, ((0, 0), (0, H2P - H2)))
    w3p = jnp.pad(w3, ((0, H2P - H2), (0, 0)))

    return (w1p.astype(jnp.bfloat16), b1p.astype(jnp.float32),
            w2p.astype(jnp.bfloat16), b2p.astype(jnp.float32),
            w3p.astype(jnp.bfloat16), b3.astype(jnp.float32))


@jax.jit
def net_forward(x_nchw, prepped):
    w1b, b1f, w2b, b2f, w3b, b3f = prepped
    B = x_nchw.shape[0]
    # x.view(B, -1), cast straight to bf16 for the MXU (no f32 intermediate).
    xb = x_nchw.reshape(B, -1).astype(jnp.bfloat16)
    D_in = xb.shape[1]          # 784
    OUT = w3b.shape[1]          # 10

    # Batch tile: large (amortizes ~0.35us/grid-step overhead), 16-row
    # granular (bf16 sublane packing), capped at 512.
    TB = min(512, _round_up(B, 16))
    Bp = _round_up(B, TB)
    # v7x dual-TC: ensure >=2 grid steps on the "parallel" batch axis when the
    # batch is big enough to split cleanly.
    if Bp // TB == 1 and Bp >= 32 and (Bp // 2) % 16 == 0:
        TB = Bp // 2
    if Bp != B:
        xb = jnp.pad(xb, ((0, Bp - B), (0, 0)))
    grid = (Bp // TB,)

    def resident(shape):
        # Same block every grid step -> DMA'd once, stays VMEM-resident.
        return pl.BlockSpec(shape, lambda i: (0, 0))

    out = pl.pallas_call(
        mlp_kernel,
        out_shape=jax.ShapeDtypeStruct((Bp, OUT), jnp.float32),
        grid=grid,
        in_specs=[
            pl.BlockSpec((TB, D_in), lambda i: (i, 0)),
            resident(w1b.shape), resident(b1f.shape),
            resident(w2b.shape), resident(b2f.shape),
            resident(w3b.shape), resident(b3f.shape),
        ],
        out_specs=pl.BlockSpec((TB, OUT), lambda i: (i, 0)),
        compiler_params=pltpu.CompilerParams(
            dimension_semantics=("parallel",)),
    )(xb, w1b, b1f, w2b, b2f, w3b, b3f)

    return out[:B]


def net_reference(x_nchw, params):
    # Pure-JAX f32 reference (for tolerance check only).
    w1, b1, w2, b2, w3, b3 = params
    x = x_nchw.reshape(x_nchw.shape[0], -1).astype(jnp.float32)
    h1 = jnp.maximum(x @ w1 + b1, 0.0)
    h2 = jnp.maximum(h1 @ w2 + b2, 0.0)
    h3 = jnp.maximum(h2 @ w3 + b3, 0.0)
    return jax.nn.softmax(h3, axis=1)


def init_params(key):
    # Deterministic init mimicking nn.Linear's U(-1/sqrt(fan_in), 1/sqrt(fan_in)).
    # Stored as (in_features, out_features) so the kernel computes x @ W + b,
    # matching PyTorch's x @ W_pt.T + b.
    def linear(key, fan_in, fan_out):
        kw, kb = jax.random.split(key)
        bound = 1.0 / jnp.sqrt(fan_in)
        w = jax.random.uniform(kw, (fan_in, fan_out), jnp.float32, -bound, bound)
        b = jax.random.uniform(kb, (1, fan_out), jnp.float32, -bound, bound)
        return w, b

    k1, k2, k3 = jax.random.split(key, 3)
    w1, b1 = linear(k1, 784, 258)
    w2, b2 = linear(k2, 258, 85)
    w3, b3 = linear(k3, 85, 10)
    return (w1, b1, w2, b2, w3, b3)


if __name__ == "__main__":
    key = jax.random.PRNGKey(0)
    kp, kx = jax.random.split(key)
    params = init_params(kp)
    prepped = prepare_params(params)            # one-time pad + bf16 cast

    B = 8
    x = jax.random.normal(kx, (B, 1, 28, 28), jnp.float32)  # NCHW, MNIST-like

    out = net_forward(x, prepped)
    out = jax.block_until_ready(out)

    assert out.shape == (B, 10)
    # Rows of a softmax sum to 1 (approx-reciprocal / bf16 tolerance).
    assert jnp.allclose(jnp.sum(out, axis=1), 1.0, atol=1e-2)
    # Match the f32 reference within bf16-weight tolerance.
    ref = net_reference(x, params)
    assert jnp.allclose(out, ref, atol=2e-2)

    print("KERNEL_OK")
</pallas_src>

<mosaic_0001>
module attributes {stable_mosaic.version = 11 : i64} {
  func.func @mlp_kernel(%arg0: i32, %arg1: memref<16x784xbf16, #tpu.memory_space<vmem>>, %arg2: memref<784x384xbf16, #tpu.memory_space<vmem>>, %arg3: memref<1x384xf32, #tpu.memory_space<vmem>>, %arg4: memref<384x128xbf16, #tpu.memory_space<vmem>>, %arg5: memref<1x128xf32, #tpu.memory_space<vmem>>, %arg6: memref<128x10xbf16, #tpu.memory_space<vmem>>, %arg7: memref<1x10xf32, #tpu.memory_space<vmem>>, %arg8: memref<16x10xf32, #tpu.memory_space<vmem>>) attributes {dimension_semantics = [#tpu.dimension_semantics<parallel>], iteration_bounds = array<i64: 1>, scalar_prefetch = 0 : i64, scratch_operands = 0 : i64, tpu.core_type = #tpu.core_type<tc>, window_params = [{transform_indices = @transform_0, window_bounds = array<i64: 16, 784>}, {pipeline_mode = #tpu.pipeline_mode<synchronous>, transform_indices = @transform_1, window_bounds = array<i64: 784, 384>}, {pipeline_mode = #tpu.pipeline_mode<synchronous>, transform_indices = @transform_2, window_bounds = array<i64: 1, 384>}, {pipeline_mode = #tpu.pipeline_mode<synchronous>, transform_indices = @transform_3, window_bounds = array<i64: 384, 128>}, {pipeline_mode = #tpu.pipeline_mode<synchronous>, transform_indices = @transform_4, window_bounds = array<i64: 1, 128>}, {pipeline_mode = #tpu.pipeline_mode<synchronous>, transform_indices = @transform_5, window_bounds = array<i64: 128, 10>}, {pipeline_mode = #tpu.pipeline_mode<synchronous>, transform_indices = @transform_6, window_bounds = array<i64: 1, 10>}, {transform_indices = @transform_7, window_bounds = array<i64: 16, 10>}]} {
    %c0 = arith.constant 0 : index
    %c0_0 = arith.constant 0 : index
    %0 = vector.load %arg1[%c0, %c0_0] : memref<16x784xbf16, #tpu.memory_space<vmem>>, vector<16x784xbf16>
    %c0_1 = arith.constant 0 : index
    %c0_2 = arith.constant 0 : index
    %1 = vector.load %arg2[%c0_1, %c0_2] : memref<784x384xbf16, #tpu.memory_space<vmem>>, vector<784x384xbf16>
    %cst = arith.constant dense<0.000000e+00> : vector<16x384xf32>
    %2 = tpu.matmul %0, %1, %cst {dimension_numbers = #tpu.dot_dimension_numbers<[1], [0], [0], [1], [0, 0, 1, 1], [], []>} : vector<16x784xbf16>, vector<784x384xbf16>, vector<16x384xf32> -> vector<16x384xf32>
    %c0_3 = arith.constant 0 : index
    %c0_4 = arith.constant 0 : index
    %3 = vector.load %arg3[%c0_3, %c0_4] : memref<1x384xf32, #tpu.memory_space<vmem>>, vector<1x384xf32>
    %4 = vector.broadcast %3 : vector<1x384xf32> to vector<16x384xf32>
    %5 = arith.addf %2, %4 : vector<16x384xf32>
    %cst_5 = arith.constant 0.000000e+00 : f32
    %6 = vector.broadcast %cst_5 : f32 to vector<16x384xf32>
    %7 = arith.maximumf %5, %6 : vector<16x384xf32>
    %8 = arith.truncf %7 : vector<16x384xf32> to vector<16x384xbf16>
    %c0_6 = arith.constant 0 : index
    %c0_7 = arith.constant 0 : index
    %9 = vector.load %arg4[%c0_6, %c0_7] : memref<384x128xbf16, #tpu.memory_space<vmem>>, vector<384x128xbf16>
    %cst_8 = arith.constant dense<0.000000e+00> : vector<16x128xf32>
    %10 = tpu.matmul %8, %9, %cst_8 {dimension_numbers = #tpu.dot_dimension_numbers<[1], [0], [0], [1], [0, 0, 1, 1], [], []>} : vector<16x384xbf16>, vector<384x128xbf16>, vector<16x128xf32> -> vector<16x128xf32>
    %c0_9 = arith.constant 0 : index
    %c0_10 = arith.constant 0 : index
    %11 = vector.load %arg5[%c0_9, %c0_10] : memref<1x128xf32, #tpu.memory_space<vmem>>, vector<1x128xf32>
    %12 = vector.broadcast %11 : vector<1x128xf32> to vector<16x128xf32>
    %13 = arith.addf %10, %12 : vector<16x128xf32>
    %cst_11 = arith.constant 0.000000e+00 : f32
    %14 = vector.broadcast %cst_11 : f32 to vector<16x128xf32>
    %15 = arith.maximumf %13, %14 : vector<16x128xf32>
    %16 = arith.truncf %15 : vector<16x128xf32> to vector<16x128xbf16>
    %c0_12 = arith.constant 0 : index
    %c0_13 = arith.constant 0 : index
    %17 = vector.load %arg6[%c0_12, %c0_13] : memref<128x10xbf16, #tpu.memory_space<vmem>>, vector<128x10xbf16>
    %cst_14 = arith.constant dense<0.000000e+00> : vector<16x10xf32>
    %18 = tpu.matmul %16, %17, %cst_14 {dimension_numbers = #tpu.dot_dimension_numbers<[1], [0], [0], [1], [0, 0, 1, 1], [], []>} : vector<16x128xbf16>, vector<128x10xbf16>, vector<16x10xf32> -> vector<16x10xf32>
    %c0_15 = arith.constant 0 : index
    %c0_16 = arith.constant 0 : index
    %19 = vector.load %arg7[%c0_15, %c0_16] : memref<1x10xf32, #tpu.memory_space<vmem>>, vector<1x10xf32>
    %20 = vector.broadcast %19 : vector<1x10xf32> to vector<16x10xf32>
    %21 = arith.addf %18, %20 : vector<16x10xf32>
    %cst_17 = arith.constant 0.000000e+00 : f32
    %22 = vector.broadcast %cst_17 : f32 to vector<16x10xf32>
    %23 = arith.maximumf %21, %22 : vector<16x10xf32>
    %cst_18 = arith.constant dense<0xFF800000> : vector<16xf32>
    %24 = vector.multi_reduction <maximumf>, %23, %cst_18 [1] : vector<16x10xf32> to vector<16xf32>
    %25 = vector.shape_cast %24 : vector<16xf32> to vector<16x1xf32>
    %26 = vector.broadcast %25 : vector<16x1xf32> to vector<16x10xf32>
    %27 = arith.subf %23, %26 : vector<16x10xf32>
    %28 = math.exp %27 : vector<16x10xf32>
    %cst_19 = arith.constant dense<0.000000e+00> : vector<16xf32>
    %29 = vector.multi_reduction <add>, %28, %cst_19 [1] : vector<16x10xf32> to vector<16xf32>
    %30 = vector.shape_cast %29 : vector<16xf32> to vector<16x1xf32>
    %31 = tpu.reciprocal %30 {approx = true} : vector<16x1xf32> -> vector<16x1xf32>
    %32 = vector.broadcast %31 : vector<16x1xf32> to vector<16x10xf32>
    %33 = arith.mulf %28, %32 : vector<16x10xf32>
    %c0_20 = arith.constant 0 : index
    %c0_21 = arith.constant 0 : index
    %34 = vector.load %arg8[%c0_20, %c0_21] : memref<16x10xf32, #tpu.memory_space<vmem>>, vector<16x10xf32>
    tpu.vector_store %arg8[%c0_20, %c0_21], %33 {strides = array<i32>} : memref<16x10xf32, #tpu.memory_space<vmem>>, vector<16x10xf32>,
    return
  }
  func.func @transform_0(%arg0: i32) -> (i32, i32) {
    %c0_i32 = arith.constant 0 : i32
    %c0_i32_0 = arith.constant 0 : i32
    return %arg0, %c0_i32 : i32, i32
  }
  func.func @transform_1(%arg0: i32) -> (i32, i32) {
    %c0_i32 = arith.constant 0 : i32
    %c0_i32_0 = arith.constant 0 : i32
    %c0_i32_1 = arith.constant 0 : i32
    return %c0_i32, %c0_i32_0 : i32, i32
  }
  func.func @transform_2(%arg0: i32) -> (i32, i32) {
    %c0_i32 = arith.constant 0 : i32
    %c0_i32_0 = arith.constant 0 : i32
    %c0_i32_1 = arith.constant 0 : i32
    return %c0_i32, %c0_i32_0 : i32, i32
  }
  func.func @transform_3(%arg0: i32) -> (i32, i32) {
    %c0_i32 = arith.constant 0 : i32
    %c0_i32_0 = arith.constant 0 : i32
    %c0_i32_1 = arith.constant 0 : i32
    return %c0_i32, %c0_i32_0 : i32, i32
  }
  func.func @transform_4(%arg0: i32) -> (i32, i32) {
    %c0_i32 = arith.constant 0 : i32
    %c0_i32_0 = arith.constant 0 : i32
    %c0_i32_1 = arith.constant 0 : i32
    return %c0_i32, %c0_i32_0 : i32, i32
  }
  func.func @transform_5(%arg0: i32) -> (i32, i32) {
    %c0_i32 = arith.constant 0 : i32
    %c0_i32_0 = arith.constant 0 : i32
    %c0_i32_1 = arith.constant 0 : i32
    return %c0_i32, %c0_i32_0 : i32, i32
  }
  func.func @transform_6(%arg0: i32) -> (i32, i32) {
    %c0_i32 = arith.constant 0 : i32
    %c0_i32_0 = arith.constant 0 : i32
    %c0_i32_1 = arith.constant 0 : i32
    return %c0_i32, %c0_i32_0 : i32, i32
  }
  func.func @transform_7(%arg0: i32) -> (i32, i32) {
    %c0_i32 = arith.constant 0 : i32
    %c0_i32_0 = arith.constant 0 : i32
    return %arg0, %c0_i32 : i32, i32
  }
}

</mosaic_0001>

<bundles_post_ra>
// kernel: net_forward.1
= control target key start
LH: loop header
LB: loop body
LE: loop exit
PB: predicated region body
PF: predicated region fallthrough
CT: control target
= control target key end

     0   :  { %12 = vsyncpa [#allocation3], 0  ;;  %s2494_s24 = smov [#allocation2]   ;;  %s2727_s0 = inlined_call_operand.vmem [shape: bf16[16,784], index: 0, kind: input, shape index: {}]   ;;  %s2728_s1 = inlined_call_operand.hbm [shape: bf16[784,384], index: 1, kind: input, shape index: {}]   ;;  %s2729_s2 = inlined_call_operand.vmem [shape: f32[1,384], index: 2, kind: input, shape index: {}]   ;;  %s2730_s3 = inlined_call_operand.vmem [shape: bf16[384,128], index: 3, kind: input, shape index: {}]   ;;  %s2731_s4 = inlined_call_operand.vmem [shape: f32[1,128], index: 4, kind: input, shape index: {}]   ;;  %s2732_s5 = inlined_call_operand.vmem [shape: bf16[128,10], index: 5, kind: input, shape index: {}]   ;;  %s2733_s6 = inlined_call_operand.vmem [shape: f32[1,10], index: 6, kind: input, shape index: {}]   ;;  %s2734_s7 = inlined_call_operand.vmem [shape: f32[16,10], index: 7, kind: output, shape index: {}]  }
   0x1   :  { %s20_s25 = sshll.u32 %s2494_s24, 4  ;;  %s2470_s28 = scalar_lea.hbm %s2728_s1, 18816  ;;  %s21_s25 = int_to_ptr.vmem [resolvable:$true] %s20_s25 }
   0x2   :  { %p2471_p0 = scmp.ne.s32.totalorder %s2728_s1, %s2470_s28  ;;  %p2474_p1 = scmp.lt.u32.totalorder %s2470_s28, %s2728_s1 }
   0x4   :  { %p2476_p2 = pnand %p2474_p1, %p2471_p0 }
   0x6   :  { %2479 = shalt.err (!%p2476_p2)
}
   0x7   :  { %s2480_s10 = scalar_lea.vmem %s21_s25, 18816  ;;  %p2485_p4 = scmp.lt.s32.totalorder %s21_s25, %s21_s25 }
   0x8   :  { %p2481_p3 = scmp.ne.s32.totalorder %s21_s25, %s2480_s10  ;;  %p2486_p5 = scmp.lt.s32.totalorder %s2480_s10, %s2480_s10 }
   0xa   :  { %p2487_p6 = por %p2486_p5, %p2485_p4 }
   0xc   :  { %p2488_p7 = pnand %p2487_p6, %p2481_p3 }
   0xe   :  { %2491 = shalt.err (!%p2488_p7)
}
   0xf   :  { %s2495_s11 = smov 192   ;;  %s2496_s12 = smov 12  }
  0x10   :  { %26 = dma.hbm_to_vmem [thread:$0]  %s2728_s1, 18816, %s21_s25, [#allocation3], %s2495_s11, %s2495_s11, %s2496_s12  }
  0x11   :  { %2492 = dma.done.wait [#allocation3], 18816  }
  0x12   :  { %2493 = vsyncadd [#allocation3], 4294948480  ;;  %v2224_v0 = vld [vmem:[#allocation2 + $0x4] ss:$12 sps:$4 sm:$0xff]   ;;  %v2226_v1 = vld [vmem:[#allocation2] ss:$12 sps:$4 sm:$0xff]  }
  0x13   :  { %1085 = vmatprep.subr.bf16.mxu0 %v2224_v0  ;;  %v2227_v2 = vld [vmem:[#allocation2 + $0x1c] ss:$12 sps:$4 sm:$0xff]   ;;  %v2229_v3 = vld [vmem:[#allocation2 + $0x18] ss:$12 sps:$4 sm:$0xff]   ;;  %v2230_v4 = vld [vmem:[#allocation2 + $0x34] ss:$12 sps:$4 sm:$0xff]  }
  0x14   :  { %1086 = vmatpush1.bf16.msra.mxu0 %v2226_v1  ;;  %v2232_v5 = vld [vmem:[#allocation2 + $0x30] ss:$12 sps:$4 sm:$0xff]   ;;  %v2233_v6 = vld [vmem:[#allocation2 + $0x4c] ss:$12 sps:$4 sm:$0xff]   ;;  %v2235_v7 = vld [vmem:[#allocation2 + $0x48] ss:$12 sps:$4 sm:$0xff]  }
  0x15   :  { %1087 = vmatprep.subr.bf16.mxu0 %v2227_v2  ;;  %v2236_v8 = vld [vmem:[#allocation2 + $0x64] ss:$12 sps:$4 sm:$0xff]   ;;  %v2238_v9 = vld [vmem:[#allocation2 + $0x60] ss:$12 sps:$4 sm:$0xff]   ;;  %v2239_v10 = vld [vmem:[#allocation2 + $0x7c] ss:$12 sps:$4 sm:$0xff]  }
  0x16   :  { %v2241_v11 = vld [vmem:[#allocation2 + $0x78] ss:$12 sps:$4 sm:$0xff]   ;;  %v2242_v12 = vld [vmem:[#allocation2 + $0x94] ss:$12 sps:$4 sm:$0xff]   ;;  %v2244_v14 = vld [vmem:[#allocation2 + $0x90] ss:$12 sps:$4 sm:$0xff]  }
  0x17   :  { %v2274_v13 = vld [vmem:[%s2727_s0 + $0x4] ss:$28 sps:$4 sm:$0xff]   ;;  %v2245_v15 = vld [vmem:[#allocation2 + $0xac] ss:$12 sps:$4 sm:$0xff]   ;;  %v2247_v16 = vld [vmem:[#allocation2 + $0xa8] ss:$12 sps:$4 sm:$0xff]  }
  0x18   :  { %1088 = vmatpush1.bf16.msra.mxu0 %v2229_v3  ;;  %1117 = vmatprep.mubr.bf16.mxu0 %v2274_v13  ;;  %v2281_v17 = vld [vmem:[#allocation2 + $0xc8] ss:$12 sps:$4 sm:$0xff]   ;;  %v2248_v19 = vld [vmem:[#allocation2 + $0xc4] ss:$12 sps:$4 sm:$0xff]   ;;  %v2286_v20 = vld [vmem:[#allocation2 + $0xe0] ss:$12 sps:$4 sm:$0xff]  }
  0x19   :  { %1089 = vmatprep.subr.bf16.mxu0 %v2230_v4  ;;  %1289 = vmatprep.mubr.bf16.mxu1 %v2274_v13  ;;  %v2282_v18 = vld [vmem:[#allocation2 + $0x8] ss:$12 sps:$4 sm:$0xff]   ;;  %v2287_v21 = vld [vmem:[#allocation2 + $0x20] ss:$12 sps:$4 sm:$0xff]   ;;  %v2291_v24 = vld [vmem:[#allocation2 + $0xf8] ss:$12 sps:$4 sm:$0xff]  }
  0x1a   :  { %2048 = vmatprep.subr.bf16.mxu1 %v2281_v17  ;;  %v2250_v22 = vld [vmem:[#allocation2 + $0xc0] ss:$12 sps:$4 sm:$0xff]   ;;  %v2251_v23 = vld [vmem:[#allocation2 + $0xdc] ss:$12 sps:$4 sm:$0xff]   ;;  %v2292_v25 = vld [vmem:[#allocation2 + $0x38] ss:$12 sps:$4 sm:$0xff]  }
  0x1b   :  { %2049 = vmatpush3.bf16.msra.mxu1 %v2282_v18  ;;  %v2253_v26 = vld [vmem:[#allocation2 + $0xd8] ss:$12 sps:$4 sm:$0xff]   ;;  %v2254_v27 = vld [vmem:[#allocation2 + $0xf4] ss:$12 sps:$4 sm:$0xff]   ;;  %v2296_v28 = vld [vmem:[#allocation2 + $0x110] ss:$12 sps:$4 sm:$0xff]  }
  0x1c   :  { %1090 = vmatpush1.bf16.msra.mxu0 %v2232_v5  ;;  %2050 = vmatprep.subr.bf16.mxu1 %v2286_v20  ;;  %v2297_v29 = vld [vmem:[#allocation2 + $0x50] ss:$12 sps:$4 sm:$0xff]   ;;  %v2301_v31 = vld [vmem:[#allocation2 + $0x128] ss:$12 sps:$4 sm:$0xff]   ;;  %v2257_v32 = vld [vmem:[#allocation2 + $0x10c] ss:$12 sps:$4 sm:$0xff]  }
  0x1d   :  { %1091 = vmatprep.subr.bf16.mxu0 %v2233_v6  ;;  %v2256_v30 = vld [vmem:[#allocation2 + $0xf0] ss:$12 sps:$4 sm:$0xff]   ;;  %v2302_v33 = vld [vmem:[#allocation2 + $0x68] ss:$12 sps:$4 sm:$0xff]   ;;  %v2306_v34 = vld [vmem:[#allocation2 + $0x140] ss:$12 sps:$4 sm:$0xff]  }
  0x1e   :  { %v2259_v35 = vld [vmem:[#allocation2 + $0x108] ss:$12 sps:$4 sm:$0xff]   ;;  %v2260_v36 = vld [vmem:[#allocation2 + $0x124] ss:$12 sps:$4 sm:$0xff]   ;;  %v2307_v37 = vld [vmem:[#allocation2 + $0x80] ss:$12 sps:$4 sm:$0xff]  }
  0x1f   :  { %2051 = vmatpush3.bf16.msra.mxu1 %v2287_v21  ;;  %v2311_v38 = vld [vmem:[#allocation2 + $0x158] ss:$12 sps:$4 sm:$0xff]   ;;  %v2262_v39 = vld [vmem:[#allocation2 + $0x120] ss:$12 sps:$4 sm:$0xff]   ;;  %v2263_v40 = vld [vmem:[#allocation2 + $0x13c] ss:$12 sps:$4 sm:$0xff]  }
  0x20   :  { %1092 = vmatpush1.bf16.msra.mxu0 %v2235_v7  ;;  %2052 = vmatprep.subr.bf16.mxu1 %v2291_v24  ;;  %v2312_v41 = vld [vmem:[#allocation2 + $0x98] ss:$12 sps:$4 sm:$0xff]   ;;  %v2316_v42 = vld [vmem:[#allocation2 + $0x170] ss:$12 sps:$4 sm:$0xff]   ;;  %v2266_v44 = vld [vmem:[#allocation2 + $0x154] ss:$12 sps:$4 sm:$0xff]  }
  0x21   :  { %1093 = vmatprep.subr.bf16.mxu0 %v2236_v8  ;;  %v2265_v43 = vld [vmem:[#allocation2 + $0x138] ss:$12 sps:$4 sm:$0xff]   ;;  %v2317_v45 = vld [vmem:[#allocation2 + $0xb0] ss:$12 sps:$4 sm:$0xff]   ;;  %v2321_v46 = vld [vmem:[#allocation2 + $0x248] ss:$12 sps:$4 sm:$0xff]  }
  0x22   :  { %v2268_v47 = vld [vmem:[#allocation2 + $0x150] ss:$12 sps:$4 sm:$0xff]   ;;  %v2269_v48 = vld [vmem:[#allocation2 + $0x16c] ss:$12 sps:$4 sm:$0xff]   ;;  %v2322_v49 = vld [vmem:[#allocation2 + $0x188] ss:$12 sps:$4 sm:$0xff]  }
  0x23   :  { %2053 = vmatpush3.bf16.msra.mxu1 %v2292_v25  ;;  %v2272_v50 = vld [vmem:[%s2727_s0] ss:$28 sps:$4 sm:$0xff]   ;;  %v2271_v52 = vld [vmem:[#allocation2 + $0x168] ss:$12 sps:$4 sm:$0xff]   ;;  %v2277_v53 = vld [vmem:[#allocation2 + $0x184] ss:$12 sps:$4 sm:$0xff]  }
  0x24   :  { %1094 = vmatpush1.bf16.msra.mxu0 %v2238_v9  ;;  %2054 = vmatprep.subr.bf16.mxu1 %v2296_v28  ;;  %v2326_v51 = vld [vmem:[#allocation2 + $0x260] ss:$12 sps:$4 sm:$0xff]   ;;  %v2331_v55 = vld [vmem:[#allocation2 + $0x278] ss:$12 sps:$4 sm:$0xff]   ;;  %v2280_v57 = vld [vmem:[#allocation2 + $0x19c] ss:$12 sps:$4 sm:$0xff]  }
  0x25   :  { %1095 = vmatprep.subr.bf16.mxu0 %v2239_v10  ;;  %v2327_v54 = vld [vmem:[#allocation2 + $0x1a0] ss:$12 sps:$4 sm:$0xff]   ;;  %v2332_v58 = vld [vmem:[#allocation2 + $0x1b8] ss:$12 sps:$4 sm:$0xff]   ;;  %v2336_v59 = vld [vmem:[#allocation2 + $0x290] ss:$12 sps:$4 sm:$0xff]  }
  0x26   :  { %v2275_v56 = vld [vmem:[#allocation2 + $0x180] ss:$12 sps:$4 sm:$0xff]   ;;  %v2278_v60 = vld [vmem:[#allocation2 + $0x198] ss:$12 sps:$4 sm:$0xff]   ;;  %v2337_v62 = vld [vmem:[#allocation2 + $0x1d0] ss:$12 sps:$4 sm:$0xff]  }
  0x27   :  { %2055 = vmatpush3.bf16.msra.mxu1 %v2297_v29  ;;  %v2285_v61 = vld [vmem:[#allocation2 + $0x1b4] ss:$12 sps:$4 sm:$0xff]   ;;  %v2283_v0 = vld [vmem:[#allocation2 + $0x1b0] ss:$12 sps:$4 sm:$0xff]   ;;  %v2290_v1 = vld [vmem:[#allocation2 + $0x1cc] ss:$12 sps:$4 sm:$0xff]  }
  0x28   :  { %1096 = vmatpush1.bf16.msra.mxu0 %v2241_v11  ;;  %2056 = vmatprep.subr.bf16.mxu1 %v2301_v31  ;;  %v2341_v63 = vld [vmem:[#allocation2 + $0x2a8] ss:$12 sps:$4 sm:$0xff]   ;;  %v2346_v4 = vld [vmem:[#allocation2 + $0x2c0] ss:$12 sps:$4 sm:$0xff]   ;;  %v2295_v6 = vld [vmem:[#allocation2 + $0x1e4] ss:$12 sps:$4 sm:$0xff]  }
  0x29   :  { %1097 = vmatprep.subr.bf16.mxu0 %v2242_v12  ;;  %v2288_v2 = vld [vmem:[#allocation2 + $0x1c8] ss:$12 sps:$4 sm:$0xff]   ;;  %v2347_v7 = vld [vmem:[#allocation2 + $0x200] ss:$12 sps:$4 sm:$0xff]   ;;  %v2351_v8 = vld [vmem:[#allocation2 + $0x2d8] ss:$12 sps:$4 sm:$0xff]  }
  0x2a   :  { %v2342_v3 = vld [vmem:[#allocation2 + $0x1e8] ss:$12 sps:$4 sm:$0xff]   ;;  %v2293_v9 = vld [vmem:[#allocation2 + $0x1e0] ss:$12 sps:$4 sm:$0xff]   ;;  %v2352_v11 = vld [vmem:[#allocation2 + $0x218] ss:$12 sps:$4 sm:$0xff]  }
  0x2b   :  { %2057 = vmatpush3.bf16.msra.mxu1 %v2302_v33  ;;  %v2355_v5 = vld [vmem:[%s2727_s0 + $0xc] ss:$28 sps:$4 sm:$0xff]   ;;  %v2359_v12 = vld [vmem:[#allocation2 + $0x2f0] ss:$12 sps:$4 sm:$0xff]   ;;  %v2298_v13 = vld [vmem:[#allocation2 + $0x1f8] ss:$12 sps:$4 sm:$0xff]  }
  0x2c   :  { %1098 = vmatpush1.bf16.msra.mxu0 %v2244_v14  ;;  %2058 = vmatprep.subr.bf16.mxu1 %v2306_v34  ;;  %v2300_v10 = vld [vmem:[#allocation2 + $0x1fc] ss:$12 sps:$4 sm:$0xff]   ;;  %v2305_v14 = vld [vmem:[#allocation2 + $0x214] ss:$12 sps:$4 sm:$0xff]   ;;  %v2310_v18 = vld [vmem:[#allocation2 + $0x22c] ss:$12 sps:$4 sm:$0xff]  }
  0x2d   :  { %1099 = vmatprep.subr.bf16.mxu0 %v2245_v15  ;;  %v2360_v15 = vld [vmem:[#allocation2 + $0x230] ss:$12 sps:$4 sm:$0xff]   ;;  %v2365_v20 = vld [vmem:[#allocation2 + $0x308] ss:$12 sps:$4 sm:$0xff]   ;;  %v2369_v21 = vld [vmem:[#allocation2 + $0x3e0] ss:$12 sps:$4 sm:$0xff]  }
  0x2e   :  { %v2303_v17 = vld [vmem:[#allocation2 + $0x210] ss:$12 sps:$4 sm:$0xff]   ;;  %v2370_v24 = vld [vmem:[#allocation2 + $0x320] ss:$12 sps:$4 sm:$0xff]   ;;  %v2374_v25 = vld [vmem:[#allocation2 + $0x3f8] ss:$12 sps:$4 sm:$0xff]  }
  0x2f   :  { %2059 = vmatpush3.bf16.msra.mxu1 %v2307_v37  ;;  %v2375_v28 = vld [vmem:[#allocation2 + $0x338] ss:$12 sps:$4 sm:$0xff]   ;;  %v2379_v29 = vld [vmem:[#allocation2 + $0x410] ss:$12 sps:$4 sm:$0xff]   ;;  %v2325_v31 = vld [vmem:[#allocation2 + $0x274] ss:$12 sps:$4 sm:$0xff]  }
  0x30   :  { %1100 = vmatpush1.bf16.msra.mxu0 %v2247_v16  ;;  %2060 = vmatprep.subr.bf16.mxu1 %v2311_v38  ;;  %v2364_v16 = vld [vmem:[#allocation2 + $0x3c8] ss:$12 sps:$4 sm:$0xff]   ;;  %v2323_v34 = vld [vmem:[#allocation2 + $0x270] ss:$12 sps:$4 sm:$0xff]   ;;  %v2389_v37 = vld [vmem:[#allocation2 + $0x440] ss:$12 sps:$4 sm:$0xff]  }
  0x31   :  { %1101 = vmatprep.subr.bf16.mxu0 %v2248_v19  ;;  %v2564_v19 = vld [vmem:[%s2727_s0 + $0x8] ss:$28 sps:$4 sm:$0xff]   ;;  %v2403_v38 = vld [vmem:[%s2727_s0 + $0x14] ss:$28 sps:$4 sm:$0xff]   ;;  %vm1081_vm0 = vcmask 130048   ;;  %vm2498_vm1 = vmmov 0  }
  0x32   :  { %v2384_v33 = vld [vmem:[#allocation2 + $0x428] ss:$12 sps:$4 sm:$0xff]   ;;  %vm1828_vm2 = vcmask 80896  }
  0x33   :  { %2061 = vmatpush3.bf16.msra.mxu1 %v2312_v41  ;;  %v2390_v41 = vld [vmem:[#allocation2 + $0x380] ss:$12 sps:$4 sm:$0xff]  }
  0x34   :  { %1102 = vmatpush1.bf16.msra.mxu0 %v2250_v22  ;;  %2062 = vmatprep.subr.bf16.mxu1 %v2316_v42  ;;  %v2308_v22 = vld [vmem:[#allocation2 + $0x228] ss:$12 sps:$4 sm:$0xff]   ;;  %v2394_v42 = vld [vmem:[#allocation2 + $0x458] ss:$12 sps:$4 sm:$0xff]  }
  0x35   :  { %1103 = vmatprep.subr.bf16.mxu0 %v2251_v23  ;;  %v2315_v23 = vld [vmem:[#allocation2 + $0x244] ss:$12 sps:$4 sm:$0xff]  }
  0x37   :  { %2063 = vmatpush3.bf16.msra.mxu1 %v2317_v45  ;;  %v2395_v45 = vld [vmem:[#allocation2 + $0x398] ss:$12 sps:$4 sm:$0xff]  }
  0x38   :  { %1104 = vmatpush1.bf16.msra.mxu0 %v2253_v26  ;;  %2070 = vmatprep.subr.bf16.mxu1 %v2321_v46  ;;  %v2313_v26 = vld [vmem:[#allocation2 + $0x240] ss:$12 sps:$4 sm:$0xff]   ;;  %v2399_v46 = vld [vmem:[#allocation2 + $0x470] ss:$12 sps:$4 sm:$0xff]  }
  0x39   :  { %1105 = vmatprep.subr.bf16.mxu0 %v2254_v27  ;;  %v2320_v27 = vld [vmem:[#allocation2 + $0x25c] ss:$12 sps:$4 sm:$0xff]  }
  0x3a   :  { %1290 = vmatmul.mubr.bf16.vlgmr.msra.gmra.mrb[0].mxu1 %v2272_v50 }
  0x3b   :  { %2071 = vmatpush3.bf16.msra.mxu1 %v2322_v49  ;;  %1330 = vmatprep.mubr.bf16.mxu1 %v2355_v5  ;;  %v2343_v49 = vld [vmem:[#allocation2 + $0x2d0] ss:$12 sps:$4 sm:$0xff]  }
  0x3c   :  { %1106 = vmatpush1.bf16.msra.mxu0 %v2256_v30  ;;  %2072 = vmatprep.subr.bf16.mxu1 %v2326_v51  ;;  %v2318_v30 = vld [vmem:[#allocation2 + $0x258] ss:$12 sps:$4 sm:$0xff]  }
  0x3d   :  { %1107 = vmatprep.subr.bf16.mxu0 %v2257_v32  ;;  %v2380_v32 = vld [vmem:[#allocation2 + $0x350] ss:$12 sps:$4 sm:$0xff]   ;;  %v2350_v51 = vld [vmem:[#allocation2 + $0x2ec] ss:$12 sps:$4 sm:$0xff]  }
  0x3f   :  { %2073 = vmatpush3.bf16.msra.mxu1 %v2327_v54  ;;  %v2348_v54 = vld [vmem:[#allocation2 + $0x2e8] ss:$12 sps:$4 sm:$0xff]  }
  0x40   :  { %1108 = vmatpush1.bf16.msra.mxu0 %v2259_v35  ;;  %2074 = vmatprep.subr.bf16.mxu1 %v2331_v55  ;;  %v2330_v35 = vld [vmem:[#allocation2 + $0x28c] ss:$12 sps:$4 sm:$0xff]   ;;  %v2358_v55 = vld [vmem:[#allocation2 + $0x304] ss:$12 sps:$4 sm:$0xff]  }
  0x41   :  { %1109 = vmatprep.subr.bf16.mxu0 %v2260_v36  ;;  %v2385_v36 = vld [vmem:[#allocation2 + $0x368] ss:$12 sps:$4 sm:$0xff]  }
  0x43   :  { %2075 = vmatpush3.bf16.msra.mxu1 %v2332_v58  ;;  %v2363_v58 = vld [vmem:[#allocation2 + $0x31c] ss:$12 sps:$4 sm:$0xff]  }
  0x44   :  { %1110 = vmatpush1.bf16.msra.mxu0 %v2262_v39  ;;  %2076 = vmatprep.subr.bf16.mxu1 %v2336_v59  ;;  %v2328_v39 = vld [vmem:[#allocation2 + $0x288] ss:$12 sps:$4 sm:$0xff]  }
  0x45   :  { %1111 = vmatprep.subr.bf16.mxu0 %v2263_v40  ;;  %v2335_v40 = vld [vmem:[#allocation2 + $0x2a4] ss:$12 sps:$4 sm:$0xff]   ;;  %v2582_v59 = vld [vmem:[%s2727_s0 + $0x18] ss:$28 sps:$4 sm:$0xff]  }
  0x47   :  { %2077 = vmatpush3.bf16.msra.mxu1 %v2337_v62  ;;  %v2366_v62 = vld [vmem:[#allocation2 + $0x330] ss:$12 sps:$4 sm:$0xff]  }
  0x48   :  { %1112 = vmatpush1.bf16.msra.mxu0 %v2265_v43  ;;  %2078 = vmatprep.subr.bf16.mxu1 %v2341_v63  ;;  %v2333_v43 = vld [vmem:[#allocation2 + $0x2a0] ss:$12 sps:$4 sm:$0xff]  }
  0x49   :  { %1113 = vmatprep.subr.bf16.mxu0 %v2266_v44  ;;  %v2340_v44 = vld [vmem:[#allocation2 + $0x2bc] ss:$12 sps:$4 sm:$0xff]   ;;  %v2373_v63 = vld [vmem:[#allocation2 + $0x34c] ss:$12 sps:$4 sm:$0xff]  }
  0x4b   :  { %2079 = vmatpush3.bf16.msra.mxu1 %v2342_v3  ;;  %v2383_v3 = vld [vmem:[#allocation2 + $0x37c] ss:$12 sps:$4 sm:$0xff]  }
  0x4c   :  { %1114 = vmatpush1.bf16.msra.mxu0 %v2268_v47  ;;  %2080 = vmatprep.subr.bf16.mxu1 %v2346_v4  ;;  %v2338_v47 = vld [vmem:[#allocation2 + $0x2b8] ss:$12 sps:$4 sm:$0xff]  }
  0x4d   :  { %1115 = vmatprep.subr.bf16.mxu0 %v2269_v48  ;;  %v2345_v48 = vld [vmem:[#allocation2 + $0x2d4] ss:$12 sps:$4 sm:$0xff]   ;;  %v2381_v4 = vld [vmem:[#allocation2 + $0x378] ss:$12 sps:$4 sm:$0xff]  }
  0x4f   :  { %2081 = vmatpush3.bf16.msra.mxu1 %v2347_v7  ;;  %v2393_v7 = vld [vmem:[#allocation2 + $0x3ac] ss:$12 sps:$4 sm:$0xff]  }
  0x50   :  { %1116 = vmatpush1.bf16.msra.mxu0 %v2271_v52  ;;  %2082 = vmatprep.subr.bf16.mxu1 %v2351_v8  ;;  %v2573_v52 = vld [vmem:[%s2727_s0 + $0x10] ss:$28 sps:$4 sm:$0xff]   ;;  %v2391_v8 = vld [vmem:[#allocation2 + $0x3a8] ss:$12 sps:$4 sm:$0xff]  }
  0x51   :  { %1128 = vmatprep.subr.bf16.mxu0 %v2277_v53  ;;  %v2410_v53 = vld [vmem:[#allocation2 + $0x488] ss:$12 sps:$4 sm:$0xff]  }
  0x53   :  { %1118 = vmatmul.mubr.bf16.vlgmr.msra.gmra.mrb[0].mxu0 %v2272_v50  ;;  %2083 = vmatpush3.bf16.msra.mxu1 %v2352_v11  ;;  %v2400_v50 = vld [vmem:[#allocation2 + $0x3b0] ss:$12 sps:$4 sm:$0xff]  }
  0x54   :  { %1129 = vmatpush1.bf16.msra.mxu0 %v2275_v56  ;;  %1160 = vmatprep.mubr.bf16.mxu0 %v2355_v5  ;;  %v2497_v56 = vmov 0.0   ;;  %v2388_v5 = vld [vmem:[#allocation2 + $0x394] ss:$12 sps:$4 sm:$0xff]   ;;  %v2406_v11 = vld [vmem:[#allocation2 + $0x3dc] ss:$12 sps:$4 sm:$0xff]  }
  0x55   :  { %1130 = vmatprep.subr.bf16.mxu0 %v2280_v57  ;;  %2084 = vmatprep.subr.bf16.mxu1 %v2359_v12  ;;  %v2356_v57 = vld [vmem:[#allocation2 + $0x300] ss:$12 sps:$4 sm:$0xff]   ;;  %v2404_v12 = vld [vmem:[#allocation2 + $0x3d8] ss:$12 sps:$4 sm:$0xff]  }
  0x57   :  { %2085 = vmatpush3.bf16.msra.mxu1 %v2360_v15  ;;  %v2413_v15 = vld [vmem:[#allocation2 + $0x40c] ss:$12 sps:$4 sm:$0xff]  }
  0x58   :  { %1131 = vmatpush1.bf16.msra.mxu0 %v2278_v60  ;;  %2092 = vmatprep.subr.bf16.mxu1 %v2364_v16  ;;  %v2361_v60 = vld [vmem:[#allocation2 + $0x318] ss:$12 sps:$4 sm:$0xff]   ;;  %v2411_v16 = vld [vmem:[#allocation2 + $0x408] ss:$12 sps:$4 sm:$0xff]  }
  0x59   :  { %1132 = vmatprep.subr.bf16.mxu0 %v2285_v61  ;;  %v2368_v61 = vld [vmem:[#allocation2 + $0x334] ss:$12 sps:$4 sm:$0xff]  }
  0x5a   :  { %1331 = vmatmul.mubr.bf16.vlgmr.msra.gmra.mrb[4].mxu1 %v2564_v19 }
  0x5b   :  { %2093 = vmatpush3.bf16.msra.mxu1 %v2365_v20  ;;  %1371 = vmatprep.mubr.bf16.mxu1 %v2403_v38  ;;  %v2418_v20 = vld [vmem:[#allocation2 + $0x438] ss:$12 sps:$4 sm:$0xff]  }
  0x5c   :  { %1133 = vmatpush1.bf16.msra.mxu0 %v2283_v0  ;;  %2094 = vmatprep.subr.bf16.mxu1 %v2369_v21  ;;  %v2371_v0 = vld [vmem:[#allocation2 + $0x348] ss:$12 sps:$4 sm:$0xff]  }
  0x5d   :  { %1134 = vmatprep.subr.bf16.mxu0 %v2290_v1  ;;  %v2378_v1 = vld [vmem:[#allocation2 + $0x364] ss:$12 sps:$4 sm:$0xff]   ;;  %v2423_v21 = vld [vmem:[#allocation2 + $0x454] ss:$12 sps:$4 sm:$0xff]  }
  0x5f   :  { %2095 = vmatpush3.bf16.msra.mxu1 %v2370_v24  ;;  %v2424_v24 = vld [vmem:[#allocation2 + $0x468] ss:$12 sps:$4 sm:$0xff]  }
  0x60   :  { %1135 = vmatpush1.bf16.msra.mxu0 %v2288_v2  ;;  %2096 = vmatprep.subr.bf16.mxu1 %v2374_v25  ;;  %v2376_v2 = vld [vmem:[#allocation2 + $0x360] ss:$12 sps:$4 sm:$0xff]   ;;  %v2429_v25 = vld [vmem:[#allocation2 + $0x484] ss:$12 sps:$4 sm:$0xff]  }
  0x61   :  { %1136 = vmatprep.subr.bf16.mxu0 %v2295_v6  ;;  %v2386_v6 = vld [vmem:[#allocation2 + $0x390] ss:$12 sps:$4 sm:$0xff]  }
  0x63   :  { %2097 = vmatpush3.bf16.msra.mxu1 %v2375_v28  ;;  %v2430_v28 = vld [vmem:[%s2730_s3 + $0x40] sm:$0xff]  }
  0x64   :  { %1137 = vmatpush1.bf16.msra.mxu0 %v2293_v9  ;;  %2098 = vmatprep.subr.bf16.mxu1 %v2379_v29  ;;  %v2398_v9 = vld [vmem:[#allocation2 + $0x3c4] ss:$12 sps:$4 sm:$0xff]  }
  0x65   :  { %1138 = vmatprep.subr.bf16.mxu0 %v2300_v10  ;;  %v2396_v10 = vld [vmem:[#allocation2 + $0x3c0] ss:$12 sps:$4 sm:$0xff]  }
  0x66   :  { %v2431_v29 = vld [vmem:[%s2730_s3] sm:$0xff]  }
  0x67   :  { %2099 = vmatpush3.bf16.msra.mxu1 %v2380_v32  ;;  %v2434_v32 = vld [vmem:[%s2730_s3 + $0x50] sm:$0xff]  }
  0x68   :  { %1139 = vmatpush1.bf16.msra.mxu0 %v2298_v13  ;;  %2100 = vmatprep.subr.bf16.mxu1 %v2384_v33  ;;  %v2409_v13 = vld [vmem:[#allocation2 + $0x3f4] ss:$12 sps:$4 sm:$0xff]  }
  0x69   :  { %1140 = vmatprep.subr.bf16.mxu0 %v2305_v14  ;;  %v2407_v14 = vld [vmem:[#allocation2 + $0x3f0] ss:$12 sps:$4 sm:$0xff]  }
  0x6a   :  { %v2435_v33 = vld [vmem:[%s2730_s3 + $0x10] sm:$0xff]  }
  0x6b   :  { %2101 = vmatpush3.bf16.msra.mxu1 %v2385_v36  ;;  %v2438_v36 = vld [vmem:[%s2730_s3 + $0x60] sm:$0xff]  }
  0x6c   :  { %1141 = vmatpush1.bf16.msra.mxu0 %v2303_v17  ;;  %2102 = vmatprep.subr.bf16.mxu1 %v2389_v37  ;;  %v2417_v17 = vld [vmem:[#allocation2 + $0x424] ss:$12 sps:$4 sm:$0xff]  }
  0x6d   :  { %1142 = vmatprep.subr.bf16.mxu0 %v2310_v18  ;;  %v2415_v18 = vld [vmem:[#allocation2 + $0x420] ss:$12 sps:$4 sm:$0xff]  }
  0x6e   :  { %v2439_v37 = vld [vmem:[%s2730_s3 + $0x20] sm:$0xff]  }
  0x6f   :  { %2103 = vmatpush3.bf16.msra.mxu1 %v2390_v41 }
  0x70   :  { %1143 = vmatpush1.bf16.msra.mxu0 %v2308_v22  ;;  %2104 = vmatprep.subr.bf16.mxu1 %v2394_v42  ;;  %v2421_v22 = vld [vmem:[#allocation2 + $0x450] ss:$12 sps:$4 sm:$0xff]  }
  0x71   :  { %1144 = vmatprep.subr.bf16.mxu0 %v2315_v23  ;;  %v2426_v23 = vld [vmem:[#allocation2 + $0x46c] ss:$12 sps:$4 sm:$0xff]  }
  0x73   :  { %2105 = vmatpush3.bf16.msra.mxu1 %v2395_v45 }
  0x74   :  { %1145 = vmatpush1.bf16.msra.mxu0 %v2313_v26  ;;  %2106 = vmatprep.subr.bf16.mxu1 %v2399_v46  ;;  %v2427_v26 = vld [vmem:[#allocation2 + $0x480] ss:$12 sps:$4 sm:$0xff]   ;;  %v247_v46 = vlaneseq }
  0x75   :  { %1146 = vmatprep.subr.bf16.mxu0 %v2320_v27  ;;  %v2499_v27 = vmov 0  }
  0x77   :  { %2107 = vmatpush3.bf16.msra.mxu1 %v2400_v50  ;;  %v2444_v50 = vld [vmem:[%s2730_s3 + $0x78] sm:$0xff]  }
  0x78   :  { %1147 = vmatpush1.bf16.msra.mxu0 %v2318_v30  ;;  %2156 = vmatprep.subr.bf16.mxu1 %v2497_v56  ;;  %v2432_v30 = vld [vmem:[%s2730_s3 + $0x48] sm:$0xff]  }
  0x79   :  { %1148 = vmatprep.subr.bf16.mxu0 %v2325_v31  ;;  %v2433_v31 = vld [vmem:[%s2730_s3 + $0x8] sm:$0xff]  }
  0x7a   :  { %1372 = vmatmul.mubr.bf16.vlgmr.msra.gmra.mrb[8].mxu1 %v2573_v52 }
  0x7b   :  { %2157 = vmatpush3.bf16.msra.mxu1 %v2410_v53  ;;  %2158 = vmatprep.mubr.msk.bf16.mxu1 %vm2498_vm1, %v2497_v56  ;;  %v245_v53 = vld [vmem:[%s2729_s2] sm:$0x7] }
  0x7c   :  { %1149 = vmatpush1.bf16.msra.mxu0 %v2323_v34  ;;  %2116 = vmatprep.subr.bf16.mxu1 %v2430_v28  ;;  %v2436_v34 = vld [vmem:[%s2730_s3 + $0x58] sm:$0xff]  }
  0x7d   :  { %1150 = vmatprep.subr.bf16.mxu0 %v2330_v35  ;;  %v2437_v35 = vld [vmem:[%s2730_s3 + $0x18] sm:$0xff]  }
  0x80   :  { %1151 = vmatpush1.bf16.msra.mxu0 %v2328_v39  ;;  %v2441_v39 = vld [vmem:[%s2730_s3 + $0x28] sm:$0xff]  }
  0x81   :  { %1152 = vmatprep.subr.bf16.mxu0 %v2335_v40 }
  0x82   :  { %2159 = vmatmul.mubr.msk.bf16.vlgmr.msra.gmra.mrb[12].mxu1 %vm1081_vm0, %v2582_v59 }
  0x83   :  { %2117 = vmatpush3.bf16.msra.mxu1 %v2431_v29 }
  0x84   :  { %1153 = vmatpush1.bf16.msra.mxu0 %v2333_v43  ;;  %2118 = vmatprep.subr.bf16.mxu1 %v2432_v30 }
  0x85   :  { %1154 = vmatprep.subr.bf16.mxu0 %v2340_v44 }
  0x87   :  { %2119 = vmatpush3.bf16.msra.mxu1 %v2433_v31 }
  0x88   :  { %1155 = vmatpush1.bf16.msra.mxu0 %v2338_v47  ;;  %2120 = vmatprep.subr.bf16.mxu1 %v2434_v32  ;;  %v2442_v47 = vld [vmem:[%s2730_s3 + $0x70] sm:$0xff]  }
  0x89   :  { %1156 = vmatprep.subr.bf16.mxu0 %v2345_v48  ;;  %v2443_v48 = vld [vmem:[%s2730_s3 + $0x30] sm:$0xff]  }
  0x8b   :  { %2121 = vmatpush3.bf16.msra.mxu1 %v2435_v33 }
  0x8c   :  { %1157 = vmatpush1.bf16.msra.mxu0 %v2343_v49  ;;  %2122 = vmatprep.subr.bf16.mxu1 %v2436_v34  ;;  %v248_v49 = vshrl.u32 %v247_v46, 7  ;;  %v2455_v46 = vld [vmem:[%s2732_s5 + $0x8] sm:$0xff]  }
  0x8d   :  { %1158 = vmatprep.subr.bf16.mxu0 %v2350_v51  ;;  %v2445_v51 = vld [vmem:[%s2730_s3 + $0x38] sm:$0xff]  }
  0x8f   :  { %2123 = vmatpush3.bf16.msra.mxu1 %v2437_v35 }
  0x90   :  { %1159 = vmatpush1.bf16.msra.mxu0 %v2348_v54  ;;  %2124 = vmatprep.subr.bf16.mxu1 %v2438_v36 }
  0x91   :  { %1171 = vmatprep.subr.bf16.mxu0 %v2358_v55 }
  0x93   :  { %1161 = vmatmul.mubr.bf16.vlgmr.msra.gmra.mrb[0].mxu0 %v2564_v19  ;;  %v2420_v19 = vld [vmem:[#allocation2 + $0x43c] ss:$12 sps:$4 sm:$0xff]   ;;  %2125 = vmatpush3.bf16.msra.mxu1 %v2439_v37  ;;  %v2446_v37 = vld [vmem:[%s2730_s3 + $0x80] sm:$0xff]  }
  0x94   :  { %1172 = vmatpush1.bf16.msra.mxu0 %v2356_v57  ;;  %1203 = vmatprep.mubr.bf16.mxu0 %v2403_v38  ;;  %v2440_v38 = vld [vmem:[%s2730_s3 + $0x68] sm:$0xff]  }
  0x95   :  { %1173 = vmatprep.subr.bf16.mxu0 %v2363_v58  ;;  %2126 = vmatprep.subr.bf16.mxu1 %v2440_v38  ;;  %v2447_v38 = vld [vmem:[%s2730_s3 + $0x88] sm:$0xff]  }
  0x97   :  { %2127 = vmatpush3.bf16.msra.mxu1 %v2441_v39  ;;  %v2448_v39 = vld [vmem:[%s2730_s3 + $0x90] sm:$0xff]  }
  0x98   :  { %1174 = vmatpush1.bf16.msra.mxu0 %v2361_v60  ;;  %2128 = vmatprep.subr.bf16.mxu1 %v2442_v47  ;;  %v2456_v47 = vld [vmem:[%s2732_s5 + $0x10] sm:$0xff]  }
  0x99   :  { %1175 = vmatprep.subr.bf16.mxu0 %v2368_v61 }
  0x9b   :  { %2129 = vmatpush3.bf16.msra.mxu1 %v2443_v48  ;;  %v2457_v48 = vld [vmem:[%s2732_s5 + $0x18] sm:$0xff]  }
  0x9c   :  { %1176 = vmatpush1.bf16.msra.mxu0 %v2366_v62  ;;  %2130 = vmatprep.subr.bf16.mxu1 %v2444_v50  ;;  %v2459_v50 = vld [vmem:[%s2732_s5 + $0x28] sm:$0xff]  }
  0x9d   :  { %1177 = vmatprep.subr.bf16.mxu0 %v2373_v63 }
  0x9f   :  { %2131 = vmatpush3.bf16.msra.mxu1 %v2445_v51  ;;  %v2460_v51 = vld [vmem:[%s2732_s5 + $0x30] sm:$0xff]  }
  0xa0   :  { %1178 = vmatpush1.bf16.msra.mxu0 %v2371_v0  ;;  %2162 = vmatprep.subr.bf16.mxu1 %v2497_v56 }
  0xa1   :  { %1179 = vmatprep.subr.bf16.mxu0 %v2378_v1 }
  0xa4   :  { %1180 = vmatpush1.bf16.msra.mxu0 %v2376_v2 }
  0xa5   :  { %1181 = vmatprep.subr.bf16.mxu0 %v2383_v3 }
  0xa8   :  { %1182 = vmatpush1.bf16.msra.mxu0 %v2381_v4 }
  0xa9   :  { %1183 = vmatprep.subr.bf16.mxu0 %v2388_v5 }
  0xac   :  { %1184 = vmatpush1.bf16.msra.mxu0 %v2386_v6 }
  0xad   :  { %1185 = vmatprep.subr.bf16.mxu0 %v2393_v7 }
  0xb0   :  { %1186 = vmatpush1.bf16.msra.mxu0 %v2391_v8 }
  0xb1   :  { %1187 = vmatprep.subr.bf16.mxu0 %v2398_v9 }
  0xb4   :  { %1188 = vmatpush1.bf16.msra.mxu0 %v2396_v10 }
  0xb5   :  { %1189 = vmatprep.subr.bf16.mxu0 %v2406_v11 }
  0xb8   :  { %1190 = vmatpush1.bf16.msra.mxu0 %v2404_v12 }
  0xb9   :  { %1191 = vmatprep.subr.bf16.mxu0 %v2409_v13 }
  0xbc   :  { %1192 = vmatpush1.bf16.msra.mxu0 %v2407_v14 }
  0xbd   :  { %1193 = vmatprep.subr.bf16.mxu0 %v2413_v15 }
  0xc0   :  { %1194 = vmatpush1.bf16.msra.mxu0 %v2411_v16 }
  0xc1   :  { %1195 = vmatprep.subr.bf16.mxu0 %v2417_v17 }
  0xc4   :  { %1196 = vmatpush1.bf16.msra.mxu0 %v2415_v18 }
  0xc5   :  { %1197 = vmatprep.subr.bf16.mxu0 %v2420_v19  ;;  %v249_v19 = vsub.s32 0, %v248_v49 }
  0xc8   :  { %1198 = vmatpush1.bf16.msra.mxu0 %v2418_v20  ;;  %v253_v20 = vsub.s32 1, %v248_v49 }
  0xc9   :  { %1199 = vmatprep.subr.bf16.mxu0 %v2423_v21  ;;  %v250_v21 = vrot.slane %v245_v53, %v249_v19 }
  0xcc   :  { %1200 = vmatpush1.bf16.msra.mxu0 %v2421_v22  ;;  %v254_v22 = vrot.slane %v245_v53, %v253_v20 }
  0xcd   :  { %1201 = vmatprep.subr.bf16.mxu0 %v2426_v23 }
  0xd0   :  { %1202 = vmatpush1.bf16.msra.mxu0 %v2424_v24 }
  0xd1   :  { %1214 = vmatprep.subr.bf16.mxu0 %v2429_v25 }
  0xd3   :  { %1204 = vmatmul.mubr.bf16.vlgmr.msra.gmra.mrb[0].mxu0 %v2573_v52  ;;  %v257_v52 = vsub.s32 2, %v248_v49  ;;  %v2458_v49 = vld [vmem:[%s2732_s5 + $0x20] sm:$0xff]  }
  0xd4   :  { %1215 = vmatpush1.bf16.msra.mxu0 %v2427_v26  ;;  %1246 = vmatprep.mubr.bf16.mxu0 %v2499_v27 }
  0xd5   :  { %v258_v54 = vrot.slane %v245_v53, %v257_v52  ;;  %v2461_v52 = vld [vmem:[%s2732_s5 + $0x38] sm:$0xff]  }
  0xdf   :  { %2012 = vmatmul.mubr.msk.bf16.vlgmr.msra.gmra.mrb[0].mxu0 %vm1081_vm0, %v2582_v59 }
 0x10d   :  { %v2064_v40 = vpop.f32.mrb[0].mxu1 }
 0x10e   :  { %v2065_v41 = vpop.f32.mrb[1].mxu1 }
 0x10f   :  { %v2066_v42 = vadd.f32 %v2065_v41, %v2064_v40  ;;  %v2067_v43 = vpop.f32.mrb[2].mxu1  ;;  %v2449_v40 = vld [vmem:[%s2730_s3 + $0x98] sm:$0xff]   ;;  %v2450_v41 = vld [vmem:[%s2730_s3 + $0xa0] sm:$0xff]  }
 0x110   :  { %v2068_v44 = vpop.f32.mrb[3].mxu1 }
 0x111   :  { %v2069_v45 = vadd.f32 %v2068_v44, %v2067_v43  ;;  %v1292_v55 = vadd.f32 %v2066_v42, %v258_v54  ;;  %v2451_v42 = vld [vmem:[%s2730_s3 + $0xa8] sm:$0xff]   ;;  %v2452_v43 = vld [vmem:[%s2730_s3 + $0xb0] sm:$0xff]   ;;  %v2453_v44 = vld [vmem:[%s2730_s3 + $0xb8] sm:$0xff]  }
 0x113   :  { %v1295_v59 = vadd.f32 %v2069_v45, %v258_v54  ;;  %v2454_v45 = vld [vmem:[%s2732_s5] sm:$0xff]  }
 0x12d   :  { %v2086_v57 = vpop.f32.mrb[4].mxu1 }
 0x12e   :  { %v2087_v58 = vpop.f32.mrb[5].mxu1 }
 0x12f   :  { %v2088_v60 = vadd.f32 %v2087_v58, %v2086_v57  ;;  %v2089_v61 = vpop.f32.mrb[6].mxu1 }
 0x130   :  { %v2090_v62 = vpop.f32.mrb[7].mxu1 }
 0x131   :  { %v1333_v63 = vadd.f32 %v2088_v60, %v1292_v55  ;;  %v2091_v0 = vadd.f32 %v2090_v62, %v2089_v61  ;;  %v2014_v60 = vld [vmem:[%s2731_s4] ss:$0 sm:$0xff] }
 0x133   :  { %v1336_v1 = vadd.f32 %v2091_v0, %v1295_v59 }
 0x14d   :  { %v2108_v2 = vpop.f32.mrb[8].mxu1 }
 0x14e   :  { %v2109_v3 = vpop.f32.mrb[9].mxu1 }
 0x14f   :  { %v2110_v4 = vadd.f32 %v2109_v3, %v2108_v2  ;;  %v2111_v5 = vpop.f32.mrb[10].mxu1 }
 0x150   :  { %v2112_v6 = vpop.f32.mrb[11].mxu1 }
 0x151   :  { %v2113_v7 = vadd.f32 %v2112_v6, %v2111_v5  ;;  %v1374_v8 = vadd.f32 %v2110_v4, %v1333_v63 }
 0x153   :  { %v1377_v9 = vadd.f32 %v2113_v7, %v1336_v1  ;;  %v2039_v7 = vld [vmem:[%s2733_s6] ss:$0 sm:$0xff] }
 0x155   :  { %v1414_v10 = vpop.f32.mrb[12].mxu1 }
 0x156   :  { %v1415_v11 = vadd.f32 %v1414_v10, %v1374_v8  ;;  %v2160_v12 = vpop.f32.mrb[13].mxu1 }
 0x157   :  { %v1417_v13 = vpop.f32.mrb[14].mxu1 }
 0x158   :  { %v1423_v14 = vmax.f32 %v1415_v11, 0.0  ;;  %v1418_v15 = vadd.f32 %v1417_v13, %v1377_v9  ;;  %v2161_v16 = vpop.f32.mrb[15].mxu1 }
 0x15a   :  { %v1426_v17 = vmax.f32 %v1418_v15, 0.0 }
 0x15c   :  { %v1429_v18 = vpack.c.bf16 %v1426_v17, %v1423_v14 }
 0x1b2   :  { %v1248_v23 = vpop.f32.mrb[0].mxu0 }
 0x1b3   :  { %v2202_v24 = vadd.f32 %v1248_v23, %v250_v21  ;;  %v1250_v25 = vpop.f32.mrb[1].mxu0 }
 0x1b4   :  { %v2203_v26 = vadd.f32 %v1250_v25, %v254_v22  ;;  %v1252_v27 = vpop.f32.mrb[2].mxu0 }
 0x1b5   :  { %v2204_v28 = vadd.f32 %v1252_v27, %v250_v21  ;;  %v1254_v29 = vpop.f32.mrb[3].mxu0  ;;  %v1421_v31 = vmax.f32 %v2202_v24, 0.0 }
 0x1b6   :  { %v2205_v30 = vadd.f32 %v1254_v29, %v254_v22  ;;  %v1422_v33 = vmax.f32 %v2203_v26, 0.0 }
 0x1b7   :  { %v1424_v32 = vmax.f32 %v2204_v28, 0.0 }
 0x1b8   :  { %v1425_v34 = vmax.f32 %v2205_v30, 0.0 }
 0x1b9   :  { %v1427_v35 = vpack.c.bf16 %v1424_v32, %v1421_v31 }
 0x1ba   :  { %v1428_v36 = vpack.c.bf16 %v1425_v34, %v1422_v33 }
 0x1bc   :  { %1661 = vmatprep.mubr.bf16.mxu1 %v1428_v36 }
 0x1bd   :  { %1662 = vmatmul.mubr.bf16.vlgmr.msra.gmra.mrb[16].mxu1 %v1427_v35 }
 0x1be   :  { %2163 = vmatpush3.bf16.msra.mxu1 %v2446_v37  ;;  %2178 = vmatprep.mubr.msk.bf16.mxu1 %vm2498_vm1, %v2497_v56 }
 0x1bf   :  { %2164 = vmatprep.subr.bf16.mxu1 %v2497_v56 }
 0x1c2   :  { %2165 = vmatpush3.bf16.msra.mxu1 %v2447_v38 }
 0x1c3   :  { %2166 = vmatprep.subr.bf16.mxu1 %v2497_v56 }
 0x1c6   :  { %2167 = vmatpush3.bf16.msra.mxu1 %v2448_v39 }
 0x1c7   :  { %2168 = vmatprep.subr.bf16.mxu1 %v2497_v56 }
 0x1ca   :  { %2169 = vmatpush3.bf16.msra.mxu1 %v2449_v40 }
 0x1cb   :  { %2170 = vmatprep.subr.bf16.mxu1 %v2497_v56 }
 0x1ce   :  { %2171 = vmatpush3.bf16.msra.mxu1 %v2450_v41 }
 0x1cf   :  { %2172 = vmatprep.subr.bf16.mxu1 %v2497_v56 }
 0x1d2   :  { %2173 = vmatpush3.bf16.msra.mxu1 %v2451_v42 }
 0x1d3   :  { %2174 = vmatprep.subr.bf16.mxu1 %v2497_v56 }
 0x1d6   :  { %2175 = vmatpush3.bf16.msra.mxu1 %v2452_v43 }
 0x1d7   :  { %2176 = vmatprep.subr.bf16.mxu1 %v2497_v56 }
 0x1da   :  { %2177 = vmatpush3.bf16.msra.mxu1 %v2453_v44 }
 0x1db   :  { %2182 = vmatprep.subr.bf16.mxu1 %v2497_v56 }
 0x1dd   :  { %2179 = vmatmul.mubr.bf16.vlgmr.msra.gmra.mrb[20].mxu1 %v1429_v18 }
 0x1de   :  { %2198 = vmatprep.mubr.msk.bf16.mxu1 %vm2498_vm1, %v2497_v56  ;;  %2183 = vmatpush3.bf16.msra.mxu1 %v2454_v45 }
 0x1df   :  { %2184 = vmatprep.subr.bf16.mxu1 %v2497_v56 }
 0x1e2   :  { %2185 = vmatpush3.bf16.msra.mxu1 %v2455_v46 }
 0x1e3   :  { %2186 = vmatprep.subr.bf16.mxu1 %v2497_v56 }
 0x1e6   :  { %2187 = vmatpush3.bf16.msra.mxu1 %v2456_v47 }
 0x1e7   :  { %2188 = vmatprep.subr.bf16.mxu1 %v2497_v56 }
 0x1ea   :  { %2189 = vmatpush3.bf16.msra.mxu1 %v2457_v48 }
 0x1eb   :  { %2190 = vmatprep.subr.bf16.mxu1 %v2497_v56 }
 0x1ee   :  { %2191 = vmatpush3.bf16.msra.mxu1 %v2458_v49 }
 0x1ef   :  { %2192 = vmatprep.subr.bf16.mxu1 %v2497_v56 }
 0x1f2   :  { %2193 = vmatpush3.bf16.msra.mxu1 %v2459_v50 }
 0x1f3   :  { %2194 = vmatprep.subr.bf16.mxu1 %v2497_v56 }
 0x1f6   :  { %2195 = vmatpush3.bf16.msra.mxu1 %v2460_v51 }
 0x1f7   :  { %2196 = vmatprep.subr.bf16.mxu1 %v2497_v56 }
 0x1fa   :  { %2197 = vmatpush3.bf16.msra.mxu1 %v2461_v52 }
 0x290   :  { %v2132_v53 = vpop.f32.mrb[16].mxu1 }
 0x291   :  { %v2133_v54 = vpop.f32.mrb[17].mxu1 }
 0x292   :  { %v2134_v55 = vadd.f32 %v2133_v54, %v2132_v53  ;;  %v2135_v57 = vpop.f32.mrb[18].mxu1 }
 0x293   :  { %v2136_v58 = vpop.f32.mrb[19].mxu1 }
 0x294   :  { %v2137_v59 = vadd.f32 %v2136_v58, %v2135_v57  ;;  %v1664_v61 = vadd.f32 %v2134_v55, %v2014_v60 }
 0x296   :  { %v1667_v56 = vadd.f32 %v2137_v59, %v2014_v60 }
 0x2b0   :  { %v1704_v62 = vpop.f32.mrb[20].mxu1 }
 0x2b1   :  { %v1705_v63 = vadd.f32 %v1704_v62, %v1664_v61  ;;  %v2180_v0 = vpop.f32.mrb[21].mxu1 }
 0x2b2   :  { %v1707_v1 = vpop.f32.mrb[22].mxu1 }
 0x2b3   :  { %v1708_v2 = vadd.f32 %v1707_v1, %v1667_v56  ;;  %v2181_v3 = vpop.f32.mrb[23].mxu1  ;;  %v1711_v4 = vmax.f32 %v1705_v63, 0.0 }
 0x2b5   :  { %v1712_v5 = vmax.f32 %v1708_v2, 0.0 }
 0x2b7   :  { %v1713_v6 = vpack.c.bf16 %v1712_v5, %v1711_v4 }
 0x2b9   :  { %2199 = vmatmul.mubr.bf16.vlgmr.msra.gmra.mrb[24].mxu1 %v1713_v6 }
 0x38c   :  { %v1819_v8 = vpop.f32.mrb[24].mxu1 }
 0x38d   :  { %v1820_v9 = vadd.f32 %v2039_v7, %v1819_v8  ;;  %v2200_v10 = vpop.f32.mrb[25].mxu1 }
 0x38e   :  { %v1822_v11 = vpop.f32.mrb[26].mxu1 }
 0x38f   :  { %v1826_v12 = vmax.f32 %v1820_v9, 0.0  ;;  %v1823_v13 = vadd.f32 %v2039_v7, %v1822_v11  ;;  %v2201_v14 = vpop.f32.mrb[27].mxu1 }
 0x391   :  { %v1827_v15 = vmax.f32 %v1823_v13, 0.0  ;;  %v1829_v16 = vsel %vm1828_vm2, %v1826_v12, -inf }
 0x392   :  { %1830 = vmax.xlane.f32.xlu0 %v1829_v16 }
 0x393   :  { %v1832_v17 = vsel %vm1828_vm2, %v1827_v15, -inf }
 0x396   :  { %1833 = vmax.xlane.f32.xlu0 %v1832_v17 }
 0x41f   :  { %v1831_v18 = vpop.xlane.xlu0 %1830 }
 0x420   :  { %v1835_v19 = vsub.f32 %v1826_v12, %v1831_v18 }
 0x422   :  { %v1837_v20 = vmul.f32 1.442695, %v1835_v19 }
 0x423   :  { %v1834_v21 = vpop.xlane.xlu0 %1833 }
 0x424   :  { %2462 = vpow2.f32 %v1837_v20  ;;  %v1836_v22 = vsub.f32 %v1827_v15, %v1834_v21 }
 0x426   :  { %v1839_v23 = vmul.f32 1.442695, %v1836_v22 }
 0x428   :  { %2464 = vpow2.f32 %v1839_v23 }
 0x42e   :  { %v2463_v24 = vpop.eup %2462 }
 0x42f   :  { %v1841_v25 = vsel %vm1828_vm2, %v2463_v24, 0.0 }
 0x430   :  { %1842 = vadd.xlane.f32.xlu1 %v1841_v25 }
 0x432   :  { %v2465_v26 = vpop.eup %2464 }
 0x433   :  { %v1844_v27 = vsel %vm1828_vm2, %v2465_v26, 0.0 }
 0x434   :  { %1845 = vadd.xlane.f32.xlu1 %v1844_v27 }
 0x4bd   :  { %v1843_v28 = vpop.xlane.xlu1 %1842 }
 0x4be   :  { %2466 = vrcp.f32 %v1843_v28 }
 0x4c1   :  { %v1846_v29 = vpop.xlane.xlu1 %1845 }
 0x4c2   :  { %2468 = vrcp.f32 %v1846_v29 }
 0x4c8   :  { %v2467_v30 = vpop.eup %2466 }
 0x4c9   :  { %v1849_v31 = vmul.f32 %v2467_v30, %v2463_v24 }
 0x4cb   :  { %1851 = vst.msk [vmem:[%s2734_s7] sm:$0xff] %vm1828_vm2, %v1849_v31 }
 0x4cc   :  { %v2469_v32 = vpop.eup %2468 }
 0x4cd   :  { %v1850_v33 = vmul.f32 %v2469_v32, %v2465_v26 }
 0x4cf   :  { %1852 = vst.msk [vmem:[%s2734_s7 + $0x8] sm:$0xff] %vm1828_vm2, %v1850_v33 }
 0x4d0   :  { %1857 = vsyncpa [#allocation3], 1 }

</bundles_post_ra>
